<compile_context>
chip_gen: v7x
topology: tpu7x:2x2x1
jax: 0.10.0
libtpu: 0.0.40
codegen_flags: <defaults>
</compile_context>

<pallas_src>
import jax
import jax.numpy as jnp
from jax.experimental import pallas as pl
from jax.experimental.pallas import tpu as pltpu

_BN_EPS = 1e-5


def _residual_kernel(x_ref, w_ref, gamma_ref, beta_ref, y_ref):
    # x stays resident across the whole feature grid (constant index_map).
    x = x_ref[...]                                                   # (N, i)
    # Linear (bias dropped -- exactly cancelled by the batch-mean subtraction).
    h = jnp.dot(x, w_ref[...], preferred_element_type=jnp.float32)  # (N, TO), MXU
    # BatchNorm1d, training mode: biased batch variance over dim 0.
    mean = jnp.mean(h, axis=0, keepdims=True)                        # (1, TO)
    var = jnp.mean(jnp.square(h - mean), axis=0, keepdims=True)      # fused reduce
    scale = gamma_ref[...] * jax.lax.rsqrt(var + _BN_EPS)            # rsqrt -> EUP
    shift = beta_ref[...] - mean * scale                             # (1, TO)
    # Folded BN affine + ReLU: one broadcast FMA pass over (N, TO).
    y_ref[...] = jnp.maximum(h * scale + shift, 0.0).astype(y_ref.dtype)


def _round_up(v, m):
    return ((v + m - 1) // m) * m


def _vmem_limit_bytes():
    """Generation-aware scoped-VMEM limit (~3/4 of physical VMEM)."""
    try:
        cap = int(pltpu.get_tpu_info().vmem_capacity_bytes)
        if cap > 0:
            return (cap * 3) // 4            # ~96 MiB on v5e/v6e, ~48 MiB on v7x
    except Exception:
        pass
    return 48 * 1024 * 1024                  # conservative fallback


def _derive_feature_tile(n, i, o, vmem_limit):
    """Largest 128-aligned output-feature tile that fits the VMEM budget."""
    o_128 = _round_up(o, 128)
    budget = int(vmem_limit * 0.8)           # headroom for compiler scratch
    avail = budget - n * i * 4               # resident x (single-buffered)
    # Per feature-column bytes: W tiles (up to 3 deep), double-buffered y, and
    # the h / epilogue intermediates (~2 copies of an (n, to) f32 slab).
    per_col = 4 * (3 * i + 4 * n)
    to = max(avail, 0) // max(per_col, 1)
    to = max(128, (to // 128) * 128)
    to = min(to, o_128)
    # Megacore (v7x): keep >= 2 feature tiles when there is enough work so the
    # "parallel" axis can shard across both TensorCores (no extra padding).
    if o_128 >= 256:
        to = min(to, max(128, ((o_128 // 2) // 128) * 128))
    return to


def residual_forward(x, w, b, gamma, beta, *, feature_tile=None,
                     use_bf16_matmul=False):
    """x: (N, i); w: (i, o) (= nn.Linear weight, transposed); b/gamma/beta: (1, o) or (o,).

    Returns concat([relu(batchnorm1d(x @ w + b)), x], axis=1), shape (N, o + i).
    Training-mode BatchNorm (batch statistics).  `b` is accepted for API
    fidelity but unused: the batch-mean subtraction cancels any per-column
    constant added by the Linear bias.
    """
    del b  # exactly cancelled by training-mode BN's batch-mean subtraction
    n, i = x.shape
    o = w.shape[1]
    out_dtype = x.dtype
    gamma = jnp.asarray(gamma, jnp.float32).reshape(1, o)
    beta = jnp.asarray(beta, jnp.float32).reshape(1, o)

    vmem_limit = _vmem_limit_bytes()
    if feature_tile is None:
        to = _derive_feature_tile(n, i, o, vmem_limit)
    else:
        to = min(_round_up(feature_tile, 128), _round_up(o, 128))
    o_pad = _round_up(o, to)
    grid_size = o_pad // to
    # Deeper prefetch on the only streamed operand (W) when the kernel is
    # HBM/DMA bound (few FLOPs per streamed W byte at small n).
    w_buffers = 3 if (n < 1024 and grid_size >= 3) else 2

    # Pad only the output-feature axis, and only when needed (x and W's
    # contraction axis are used as-is: no per-call HBM copies of x / W-K).
    if o_pad != o:
        w_p = jnp.pad(w, ((0, 0), (0, o_pad - o)))
        gamma_p = jnp.pad(gamma, ((0, 0), (0, o_pad - o)))  # 0 keeps scale=0 (no NaN)
        beta_p = jnp.pad(beta, ((0, 0), (0, o_pad - o)))
    else:
        w_p, gamma_p, beta_p = w, gamma, beta

    x_in = x
    if use_bf16_matmul:
        # Halves streamed W bytes / roughly doubles MXU rate; accumulation and
        # all BN statistics stay f32 inside the kernel.
        x_in = x.astype(jnp.bfloat16)
        w_p = w_p.astype(jnp.bfloat16)

    cost = pl.CostEstimate(
        flops=2 * n * i * o_pad,
        transcendentals=o_pad,  # one rsqrt per output column
        bytes_accessed=(x_in.dtype.itemsize * n * i
                        + w_p.dtype.itemsize * i * o_pad
                        + 4 * 2 * o_pad
                        + out_dtype.itemsize * n * o_pad),
    )

    # TODO(synk): add a batch-tiled two-pass BN path (sum / sum-of-squares
    # accumulators over an "arbitrary" batch-tile grid axis) for shapes where
    # resident x exceeds the VMEM budget (matters on v7x's 64 MiB VMEM).
    def _run(in_specs):
        return pl.pallas_call(
            _residual_kernel,
            out_shape=jax.ShapeDtypeStruct((n, o_pad), out_dtype),
            grid=(grid_size,),
            in_specs=in_specs,
            out_specs=pl.BlockSpec((n, to), lambda j: (0, j)),
            compiler_params=pltpu.CompilerParams(
                # BN stats are per-column => feature tiles are fully independent.
                dimension_semantics=("parallel",),
                vmem_limit_bytes=vmem_limit,
            ),
            cost_estimate=cost,
        )(x_in, w_p, gamma_p, beta_p)

    try:
        # Buffer-count hints: x is resident (1 buffer suffices, its index_map is
        # constant); W is the only streamed operand (deeper prefetch if DMA-bound).
        y_pad = _run([
            pl.BlockSpec((n, i), lambda j: (0, 0), pipeline_mode=pl.Buffered(1)),
            pl.BlockSpec((i, to), lambda j: (0, j),
                         pipeline_mode=pl.Buffered(w_buffers)),
            pl.BlockSpec((1, to), lambda j: (0, j)),   # gamma
            pl.BlockSpec((1, to), lambda j: (0, j)),   # beta
        ])
    except Exception:
        # Fallback for Pallas versions without pipeline_mode / Buffered.
        y_pad = _run([
            pl.BlockSpec((n, i), lambda j: (0, 0)),
            pl.BlockSpec((i, to), lambda j: (0, j)),
            pl.BlockSpec((1, to), lambda j: (0, j)),
            pl.BlockSpec((1, to), lambda j: (0, j)),
        ])

    # TODO(synk): when o % 128 == 0, fuse this passthrough concat into the kernel
    # (write resident x into the tail columns of an (n, o+i) output) to remove
    # the extra HBM round-trip; kept in the wrapper for generality.
    y = y_pad[:, :o] if o_pad != o else y_pad
    return jnp.concatenate([y, x], axis=1)


def _reference(x, w, b, gamma, beta):
    h = x @ w + b
    mean = jnp.mean(h, axis=0, keepdims=True)
    var = jnp.mean((h - mean) ** 2, axis=0, keepdims=True)
    h = (h - mean) * jax.lax.rsqrt(var + _BN_EPS)
    h = h * gamma + beta
    return jnp.concatenate([jnp.maximum(h, 0.0), x], axis=1)


if __name__ == "__main__":
    N, I, O = 8, 32, 64  # batch, input features, output features

    key = jax.random.PRNGKey(0)
    kx, kw, kb = jax.random.split(key, 3)

    x = jax.random.normal(kx, (N, I), dtype=jnp.float32)

    # Deterministic parameter init (matches nn.Linear uniform bound; BN defaults).
    bound = 1.0 / (I ** 0.5)
    w = jax.random.uniform(kw, (I, O), dtype=jnp.float32, minval=-bound, maxval=bound)
    b = jax.random.uniform(kb, (1, O), dtype=jnp.float32, minval=-bound, maxval=bound)
    gamma = jnp.ones((1, O), dtype=jnp.float32)   # BatchNorm1d weight default
    beta = jnp.zeros((1, O), dtype=jnp.float32)   # BatchNorm1d bias default

    out = jax.block_until_ready(residual_forward(x, w, b, gamma, beta))

    ref = _reference(x, w, b, gamma, beta)
    assert out.shape == (N, O + I), out.shape
    assert jnp.allclose(out, ref, atol=1e-3, rtol=1e-3), "mismatch vs reference"

    print("KERNEL_OK")
</pallas_src>

<mosaic_0001>
module attributes {stable_mosaic.version = 11 : i64} {
  func.func @_residual_kernel(%arg0: i32, %arg1: memref<8x32xf32, #tpu.memory_space<vmem>>, %arg2: memref<32x128xf32, #tpu.memory_space<vmem>>, %arg3: memref<1x128xf32, #tpu.memory_space<vmem>>, %arg4: memref<1x128xf32, #tpu.memory_space<vmem>>, %arg5: memref<8x128xf32, #tpu.memory_space<vmem>>) attributes {dimension_semantics = [#tpu.dimension_semantics<parallel>], iteration_bounds = array<i64: 1>, scalar_prefetch = 0 : i64, scratch_operands = 0 : i64, tpu.core_type = #tpu.core_type<tc>, window_params = [{pipeline_mode = #tpu.pipeline_mode<synchronous>, transform_indices = @transform_0, window_bounds = array<i64: 8, 32>}, {pipeline_mode = #tpu.pipeline_mode<double_buffered>, transform_indices = @transform_1, window_bounds = array<i64: 32, 128>}, {transform_indices = @transform_2, window_bounds = array<i64: 1, 128>}, {transform_indices = @transform_3, window_bounds = array<i64: 1, 128>}, {transform_indices = @transform_4, window_bounds = array<i64: 8, 128>}]} {
    %c0 = arith.constant 0 : index
    %c0_0 = arith.constant 0 : index
    %0 = vector.load %arg1[%c0, %c0_0] : memref<8x32xf32, #tpu.memory_space<vmem>>, vector<8x32xf32>
    %c0_1 = arith.constant 0 : index
    %c0_2 = arith.constant 0 : index
    %1 = vector.load %arg2[%c0_1, %c0_2] : memref<32x128xf32, #tpu.memory_space<vmem>>, vector<32x128xf32>
    %cst = arith.constant dense<0.000000e+00> : vector<8x128xf32>
    %2 = tpu.matmul %0, %1, %cst {dimension_numbers = #tpu.dot_dimension_numbers<[1], [0], [0], [1], [0, 0, 1, 1], [], []>} : vector<8x32xf32>, vector<32x128xf32>, vector<8x128xf32> -> vector<8x128xf32>
    %cst_3 = arith.constant dense<0.000000e+00> : vector<128xf32>
    %3 = vector.multi_reduction <add>, %2, %cst_3 [0] : vector<8x128xf32> to vector<128xf32>
    %4 = vector.shape_cast %3 : vector<128xf32> to vector<1x128xf32>
    %cst_4 = arith.constant 8.000000e+00 : f32
    %5 = vector.broadcast %cst_4 : f32 to vector<1x128xf32>
    %6 = arith.divf %4, %5 : vector<1x128xf32>
    %7 = vector.broadcast %6 : vector<1x128xf32> to vector<8x128xf32>
    %8 = arith.subf %2, %7 : vector<8x128xf32>
    %9 = arith.mulf %8, %8 : vector<8x128xf32>
    %cst_5 = arith.constant dense<0.000000e+00> : vector<128xf32>
    %10 = vector.multi_reduction <add>, %9, %cst_5 [0] : vector<8x128xf32> to vector<128xf32>
    %11 = vector.shape_cast %10 : vector<128xf32> to vector<1x128xf32>
    %cst_6 = arith.constant 8.000000e+00 : f32
    %12 = vector.broadcast %cst_6 : f32 to vector<1x128xf32>
    %13 = arith.divf %11, %12 : vector<1x128xf32>
    %c0_7 = arith.constant 0 : index
    %c0_8 = arith.constant 0 : index
    %14 = vector.load %arg3[%c0_7, %c0_8] : memref<1x128xf32, #tpu.memory_space<vmem>>, vector<1x128xf32>
    %cst_9 = arith.constant 9.99999974E-6 : f32
    %15 = vector.broadcast %cst_9 : f32 to vector<1x128xf32>
    %16 = arith.addf %13, %15 : vector<1x128xf32>
    %17 = math.rsqrt %16 : vector<1x128xf32>
    %18 = arith.mulf %14, %17 : vector<1x128xf32>
    %c0_10 = arith.constant 0 : index
    %c0_11 = arith.constant 0 : index
    %19 = vector.load %arg4[%c0_10, %c0_11] : memref<1x128xf32, #tpu.memory_space<vmem>>, vector<1x128xf32>
    %20 = arith.mulf %6, %18 : vector<1x128xf32>
    %21 = arith.subf %19, %20 : vector<1x128xf32>
    %22 = vector.broadcast %18 : vector<1x128xf32> to vector<8x128xf32>
    %23 = arith.mulf %2, %22 : vector<8x128xf32>
    %24 = vector.broadcast %21 : vector<1x128xf32> to vector<8x128xf32>
    %25 = arith.addf %23, %24 : vector<8x128xf32>
    %cst_12 = arith.constant 0.000000e+00 : f32
    %26 = vector.broadcast %cst_12 : f32 to vector<8x128xf32>
    %27 = arith.maximumf %25, %26 : vector<8x128xf32>
    %c0_13 = arith.constant 0 : index
    %c0_14 = arith.constant 0 : index
    %28 = vector.load %arg5[%c0_13, %c0_14] : memref<8x128xf32, #tpu.memory_space<vmem>>, vector<8x128xf32>
    tpu.vector_store %arg5[%c0_13, %c0_14], %27 {strides = array<i32>} : memref<8x128xf32, #tpu.memory_space<vmem>>, vector<8x128xf32>,
    return
  }
  func.func @transform_0(%arg0: i32) -> (i32, i32) {
    %c0_i32 = arith.constant 0 : i32
    %c0_i32_0 = arith.constant 0 : i32
    %c0_i32_1 = arith.constant 0 : i32
    return %c0_i32, %c0_i32_0 : i32, i32
  }
  func.func @transform_1(%arg0: i32) -> (i32, i32) {
    %c0_i32 = arith.constant 0 : i32
    %c0_i32_0 = arith.constant 0 : i32
    return %c0_i32, %arg0 : i32, i32
  }
  func.func @transform_2(%arg0: i32) -> (i32, i32) {
    %c0_i32 = arith.constant 0 : i32
    %c0_i32_0 = arith.constant 0 : i32
    return %c0_i32, %arg0 : i32, i32
  }
  func.func @transform_3(%arg0: i32) -> (i32, i32) {
    %c0_i32 = arith.constant 0 : i32
    %c0_i32_0 = arith.constant 0 : i32
    return %c0_i32, %arg0 : i32, i32
  }
  func.func @transform_4(%arg0: i32) -> (i32, i32) {
    %c0_i32 = arith.constant 0 : i32
    %c0_i32_0 = arith.constant 0 : i32
    return %c0_i32, %arg0 : i32, i32
  }
}

module attributes {stable_mosaic.version = 11 : i64} {
  func.func @_residual_kernel(%arg0: i32, %arg1: memref<8x32xf32, #tpu.memory_space<vmem>>, %arg2: memref<32x128xf32, #tpu.memory_space<vmem>>, %arg3: memref<1x128xf32, #tpu.memory_space<vmem>>, %arg4: memref<1x128xf32, #tpu.memory_space<vmem>>, %arg5: memref<8x128xf32, #tpu.memory_space<vmem>>) attributes {dimension_semantics = [#tpu.dimension_semantics<parallel>], iteration_bounds = array<i64: 1>, scalar_prefetch = 0 : i64, scratch_operands = 0 : i64, tpu.core_type = #tpu.core_type<tc>, window_params = [{pipeline_mode = #tpu.pipeline_mode<synchronous>, transform_indices = @transform_0, window_bounds = array<i64: 8, 32>}, {transform_indices = @transform_1, window_bounds = array<i64: 32, 128>}, {transform_indices = @transform_2, window_bounds = array<i64: 1, 128>}, {transform_indices = @transform_3, window_bounds = array<i64: 1, 128>}, {transform_indices = @transform_4, window_bounds = array<i64: 8, 128>}]} {
    %c0 = arith.constant 0 : index
    %c0_0 = arith.constant 0 : index
    %0 = vector.load %arg1[%c0, %c0_0] : memref<8x32xf32, #tpu.memory_space<vmem>>, vector<8x32xf32>
    %c0_1 = arith.constant 0 : index
    %c0_2 = arith.constant 0 : index
    %1 = vector.load %arg2[%c0_1, %c0_2] : memref<32x128xf32, #tpu.memory_space<vmem>>, vector<32x128xf32>
    %cst = arith.constant dense<0.000000e+00> : vector<8x128xf32>
    %2 = tpu.matmul %0, %1, %cst {dimension_numbers = #tpu.dot_dimension_numbers<[1], [0], [0], [1], [0, 0, 1, 1], [], []>} : vector<8x32xf32>, vector<32x128xf32>, vector<8x128xf32> -> vector<8x128xf32>
    %cst_3 = arith.constant dense<0.000000e+00> : vector<128xf32>
    %3 = vector.multi_reduction <add>, %2, %cst_3 [0] : vector<8x128xf32> to vector<128xf32>
    %4 = vector.shape_cast %3 : vector<128xf32> to vector<1x128xf32>
    %cst_4 = arith.constant 8.000000e+00 : f32
    %5 = vector.broadcast %cst_4 : f32 to vector<1x128xf32>
    %6 = arith.divf %4, %5 : vector<1x128xf32>
    %7 = vector.broadcast %6 : vector<1x128xf32> to vector<8x128xf32>
    %8 = arith.subf %2, %7 : vector<8x128xf32>
    %9 = arith.mulf %8, %8 : vector<8x128xf32>
    %cst_5 = arith.constant dense<0.000000e+00> : vector<128xf32>
    %10 = vector.multi_reduction <add>, %9, %cst_5 [0] : vector<8x128xf32> to vector<128xf32>
    %11 = vector.shape_cast %10 : vector<128xf32> to vector<1x128xf32>
    %cst_6 = arith.constant 8.000000e+00 : f32
    %12 = vector.broadcast %cst_6 : f32 to vector<1x128xf32>
    %13 = arith.divf %11, %12 : vector<1x128xf32>
    %c0_7 = arith.constant 0 : index
    %c0_8 = arith.constant 0 : index
    %14 = vector.load %arg3[%c0_7, %c0_8] : memref<1x128xf32, #tpu.memory_space<vmem>>, vector<1x128xf32>
    %cst_9 = arith.constant 9.99999974E-6 : f32
    %15 = vector.broadcast %cst_9 : f32 to vector<1x128xf32>
    %16 = arith.addf %13, %15 : vector<1x128xf32>
    %17 = math.rsqrt %16 : vector<1x128xf32>
    %18 = arith.mulf %14, %17 : vector<1x128xf32>
    %c0_10 = arith.constant 0 : index
    %c0_11 = arith.constant 0 : index
    %19 = vector.load %arg4[%c0_10, %c0_11] : memref<1x128xf32, #tpu.memory_space<vmem>>, vector<1x128xf32>
    %20 = arith.mulf %6, %18 : vector<1x128xf32>
    %21 = arith.subf %19, %20 : vector<1x128xf32>
    %22 = vector.broadcast %18 : vector<1x128xf32> to vector<8x128xf32>
    %23 = arith.mulf %2, %22 : vector<8x128xf32>
    %24 = vector.broadcast %21 : vector<1x128xf32> to vector<8x128xf32>
    %25 = arith.addf %23, %24 : vector<8x128xf32>
    %cst_12 = arith.constant 0.000000e+00 : f32
    %26 = vector.broadcast %cst_12 : f32 to vector<8x128xf32>
    %27 = arith.maximumf %25, %26 : vector<8x128xf32>
    %c0_13 = arith.constant 0 : index
    %c0_14 = arith.constant 0 : index
    %28 = vector.load %arg5[%c0_13, %c0_14] : memref<8x128xf32, #tpu.memory_space<vmem>>, vector<8x128xf32>
    tpu.vector_store %arg5[%c0_13, %c0_14], %27 {strides = array<i32>} : memref<8x128xf32, #tpu.memory_space<vmem>>, vector<8x128xf32>,
    return
  }
  func.func @transform_0(%arg0: i32) -> (i32, i32) {
    %c0_i32 = arith.constant 0 : i32
    %c0_i32_0 = arith.constant 0 : i32
    %c0_i32_1 = arith.constant 0 : i32
    return %c0_i32, %c0_i32_0 : i32, i32
  }
  func.func @transform_1(%arg0: i32) -> (i32, i32) {
    %c0_i32 = arith.constant 0 : i32
    %c0_i32_0 = arith.constant 0 : i32
    return %c0_i32, %arg0 : i32, i32
  }
  func.func @transform_2(%arg0: i32) -> (i32, i32) {
    %c0_i32 = arith.constant 0 : i32
    %c0_i32_0 = arith.constant 0 : i32
    return %c0_i32, %arg0 : i32, i32
  }
  func.func @transform_3(%arg0: i32) -> (i32, i32) {
    %c0_i32 = arith.constant 0 : i32
    %c0_i32_0 = arith.constant 0 : i32
    return %c0_i32, %arg0 : i32, i32
  }
  func.func @transform_4(%arg0: i32) -> (i32, i32) {
    %c0_i32 = arith.constant 0 : i32
    %c0_i32_0 = arith.constant 0 : i32
    return %c0_i32, %arg0 : i32, i32
  }
}

</mosaic_0001>

<bundles_post_ra>
// kernel: tpu_custom_call.1
= control target key start
LH: loop header
LB: loop body
LE: loop exit
PB: predicated region body
PF: predicated region fallthrough
CT: control target
= control target key end

     0   :  { %9 = vsyncpa [#allocation3], 0  ;;  %s366_s0 = inlined_call_operand.hbm [shape: f32[8,32], index: 0, kind: input, shape index: {}]   ;;  %s367_s1 = inlined_call_operand.hbm [shape: f32[32,128], index: 1, kind: input, shape index: {}]   ;;  %s368_s2 = inlined_call_operand.vmem [shape: f32[1,128], index: 2, kind: input, shape index: {}]   ;;  %s369_s3 = inlined_call_operand.vmem [shape: f32[1,128], index: 3, kind: input, shape index: {}]   ;;  %s370_s4 = inlined_call_operand.hbm [shape: f32[8,128], index: 4, kind: output, shape index: {}]  }
   0x1   :  { %10 = vsyncpa [#allocation6], 0 }
   0x2   :  { %11 = vsyncpa [#allocation4], 0  ;;  %s284_s15 = smov [#allocation2]   ;;  %s285_s17 = smov [#allocation5]  }
   0x3   :  { %s18_s16 = sshll.u32 %s284_s15, 4  ;;  %s27_s18 = sshll.u32 %s285_s17, 4  ;;  %s19_s16 = int_to_ptr.vmem [resolvable:$true] %s18_s16  ;;  %s317_s18 = int_to_ptr.vmem [resolvable:$true] %s27_s18 }
   0x4   :  { %s212_s21 = scalar_lea.hbm %s366_s0, 128 }
   0x5   :  { %p213_p0 = scmp.ne.s32.totalorder %s366_s0, %s212_s21  ;;  %p216_p1 = scmp.lt.u32.totalorder %s212_s21, %s366_s0 }
   0x7   :  { %p218_p2 = pnand %p216_p1, %p213_p0 }
   0x9   :  { %221 = shalt.err (!%p218_p2)
}
   0xa   :  { %s222_s26 = scalar_lea.vmem %s19_s16, 128  ;;  %p227_p4 = scmp.lt.s32.totalorder %s19_s16, %s19_s16 }
   0xb   :  { %p223_p3 = scmp.ne.s32.totalorder %s19_s16, %s222_s26  ;;  %p228_p5 = scmp.lt.s32.totalorder %s222_s26, %s222_s26 }
   0xd   :  { %p229_p6 = por %p228_p5, %p227_p4 }
   0xf   :  { %p230_p7 = pnand %p229_p6, %p223_p3 }
  0x11   :  { %233 = shalt.err (!%p230_p7)
}
  0x12   :  { %21 = dma.hbm_to_vmem [thread:$0]  %s366_s0, 128, %s19_s16, [#allocation3]  }
  0x13   :  { %s234_s5 = scalar_lea.hbm %s367_s1, 512 }
  0x14   :  { %p235_p8 = scmp.ne.s32.totalorder %s367_s1, %s234_s5  ;;  %p238_p9 = scmp.lt.u32.totalorder %s234_s5, %s367_s1 }
  0x16   :  { %p240_p10 = pnand %p238_p9, %p235_p8 }
  0x18   :  { %243 = shalt.err (!%p240_p10)
}
  0x19   :  { %s244_s10 = scalar_lea.vmem %s317_s18, 512  ;;  %p249_p12 = scmp.lt.s32.totalorder %s317_s18, %s317_s18 }
  0x1a   :  { %p245_p11 = scmp.ne.s32.totalorder %s317_s18, %s244_s10  ;;  %p250_p13 = scmp.lt.s32.totalorder %s244_s10, %s244_s10 }
  0x1c   :  { %p251_p0 = por %p250_p13, %p249_p12 }
  0x1e   :  { %p252_p1 = pnand %p251_p0, %p245_p11 }
  0x20   :  { %255 = shalt.err (!%p252_p1)
}
  0x21   :  { %s286_s0 = smov 128   ;;  %s287_s11 = smov 8  }
  0x22   :  { %33 = dma.hbm_to_vmem [thread:$0]  %s367_s1, 512, %s317_s18, [#allocation6], %s286_s0, %s286_s0, %s287_s11  }
  0x23   :  { %278 = dma.done.wait [#allocation3], 128  }
  0x24   :  { %279 = vsyncadd [#allocation3], 4294967168 }
  0x25   :  { %280 = dma.done.wait [#allocation6], 512  }
  0x26   :  { %281 = vsyncadd [#allocation6], 4294966784  ;;  %v288_v0 = vmov 0.0|0.0   ;;  %vm289_vm0 = vmmov 0   ;;  %v290_v1 = vmov 0.0   ;;  %v45_v2 = vld [vmem:[#allocation5] sm:$0xff]  ;;  %v148_v28 = vlaneseq }
  0x27   :  { %196 = vmatprep.subr.bf16.mxu0 %v288_v0  ;;  %193 = vmatprep.mubr.msk.f32.mxu0 %vm289_vm0, %v290_v1  ;;  %v46_v3 = vld [vmem:[#allocation5 + $0x8] sm:$0xff]  ;;  %v47_v4 = vld [vmem:[#allocation5 + $0x10] sm:$0xff]  ;;  %v48_v6 = vld [vmem:[#allocation5 + $0x18] sm:$0xff]  ;;  %vm49_vm1 = vcmask 261120   ;;  %s291_s17 = smov [#allocation7]  }
  0x28   :  { %v197_v5 = vpack.c.bf16 %v46_v3, %v45_v2  ;;  %v200_v7 = vpack.c.bf16 %v48_v6, %v47_v4  ;;  %v44_v8 = vld [vmem:[#allocation2] sm:$0xff]  ;;  %v149_v29 = vshrl.u32 %v148_v28, 7  ;;  %s169_s18 = sshll.u32 %s291_s17, 4  ;;  %s170_s18 = int_to_ptr.vmem [resolvable:$true] %s169_s18 }
  0x29   :  { %v140_v30 = vld [vmem:[%s368_s2] sm:$0x1]  ;;  %s256_s19 = scalar_lea.vmem %s170_s18, 128  ;;  %p261_p3 = scmp.lt.s32.totalorder %s170_s18, %s170_s18 }
  0x2a   :  { %198 = vmatpush3.bf16.msra.mxu0 %v197_v5  ;;  %v150_v31 = vsub.s32 0, %v149_v29  ;;  %v144_v34 = vld [vmem:[%s369_s3] sm:$0x1]  ;;  %p257_p2 = scmp.ne.s32.totalorder %s170_s18, %s256_s19  ;;  %p262_p4 = scmp.lt.s32.totalorder %s256_s19, %s256_s19 }
  0x2b   :  { %199 = vmatprep.subr.bf16.mxu0 %v288_v0 }
  0x2c   :  { %p263_p5 = por %p262_p4, %p261_p3 }
  0x2e   :  { %201 = vmatpush3.bf16.msra.mxu0 %v200_v7  ;;  %p264_p6 = pnand %p263_p5, %p257_p2 }
  0x31   :  { %194 = vmatmul.mubr.msk.f32.vlgmr.msra.gmra.mrb[0].mxu0 %vm49_vm1, %v44_v8 }
 0x104   :  { %v119_v9 = vpop.f32.mrb[0].mxu0 }
 0x105   :  { %v123_v10 = vrot.slane %v119_v9, 4  ;;  %v195_v11 = vpop.f32.mrb[1].mxu0 }
 0x107   :  { %v124_v12 = vadd.f32 %v123_v10, %v119_v9 }
 0x109   :  { %v125_v13 = vrot.slane %v124_v12, 2 }
 0x10b   :  { %v126_v14 = vadd.f32 %v125_v13, %v124_v12 }
 0x10d   :  { %v127_v15 = vrot.slane %v126_v14, 1 }
 0x10f   :  { %v128_v16 = vadd.f32 %v127_v15, %v126_v14 }
 0x111   :  { %v130_v17 = vmul.f32 0.125, %v128_v16 }
 0x113   :  { %v131_v18 = vsub.f32 %v119_v9, %v130_v17 }
 0x115   :  { %v132_v19 = vmul.f32 %v131_v18, %v131_v18 }
 0x117   :  { %v133_v20 = vrot.slane %v132_v19, 4 }
 0x119   :  { %v134_v21 = vadd.f32 %v133_v20, %v132_v19 }
 0x11b   :  { %v135_v22 = vrot.slane %v134_v21, 2 }
 0x11d   :  { %v136_v23 = vadd.f32 %v135_v22, %v134_v21 }
 0x11f   :  { %v137_v24 = vrot.slane %v136_v23, 1 }
 0x121   :  { %v138_v25 = vadd.f32 %v137_v24, %v136_v23 }
 0x123   :  { %v139_v26 = vmul.f32 0.125, %v138_v25 }
 0x125   :  { %v141_v27 = vadd.f32 1e-05, %v139_v26 }
 0x127   :  { %210 = vrsqrt.f32 %v141_v27 }
 0x131   :  { %v211_v32 = vpop.eup %210 }
 0x132   :  { %v143_v33 = vmul.f32 %v211_v32, %v140_v30 }
 0x134   :  { %v145_v35 = vmul.f32 %v143_v33, %v130_v17  ;;  %v151_v36 = vrot.slane %v143_v33, %v150_v31 }
 0x136   :  { %v146_v37 = vsub.f32 %v144_v34, %v145_v35  ;;  %v153_v38 = vmul.f32 %v151_v36, %v119_v9 }
 0x138   :  { %v158_v39 = vrot.slane %v146_v37, %v150_v31 }
 0x13a   :  { %v160_v40 = vadd.f32 %v158_v39, %v153_v38 }
 0x13c   :  { %v161_v41 = vmax.f32 %v160_v40, 0.0 }
 0x13e   :  { %162 = vst [vmem:[#allocation7] sm:$0xff] %v161_v41 }
 0x13f   :  { %267 = shalt.err (!%p264_p6)
}
 0x140   :  { %s268_s20 = scalar_lea.hbm %s370_s4, 128 }
 0x141   :  { %p269_p7 = scmp.ne.s32.totalorder %s370_s4, %s268_s20  ;;  %p272_p8 = scmp.lt.u32.totalorder %s268_s20, %s370_s4 }
 0x143   :  { %p274_p9 = pnand %p272_p8, %p269_p7 }
 0x145   :  { %277 = shalt.err (!%p274_p9)
}
 0x146   :  { %172 = dma.vmem_to_hbm [thread:$0]  %s170_s18, 128, %s370_s4, [#allocation4]  }
 0x147   :  { %282 = dma.done.wait [#allocation4], 128  }
 0x148   :  { %283 = vsyncadd [#allocation4], 4294967168 }
 0x149   :  { %176 = vsyncpa [#allocation3], 1 }
 0x14a   :  { %177 = vsyncpa [#allocation6], 1 }
 0x14b   :  { %178 = vsyncpa [#allocation4], 1 }

// kernel: tpu_custom_call.1
= control target key start
LH: loop header
LB: loop body
LE: loop exit
PB: predicated region body
PF: predicated region fallthrough
CT: control target
= control target key end

     0   :  { %9 = vsyncpa [#allocation3], 0  ;;  %s366_s0 = inlined_call_operand.hbm [shape: f32[8,32], index: 0, kind: input, shape index: {}]   ;;  %s367_s1 = inlined_call_operand.hbm [shape: f32[32,128], index: 1, kind: input, shape index: {}]   ;;  %s368_s2 = inlined_call_operand.vmem [shape: f32[1,128], index: 2, kind: input, shape index: {}]   ;;  %s369_s3 = inlined_call_operand.vmem [shape: f32[1,128], index: 3, kind: input, shape index: {}]   ;;  %s370_s4 = inlined_call_operand.hbm [shape: f32[8,128], index: 4, kind: output, shape index: {}]  }
   0x1   :  { %10 = vsyncpa [#allocation6], 0 }
   0x2   :  { %11 = vsyncpa [#allocation4], 0  ;;  %s284_s15 = smov [#allocation2]   ;;  %s285_s17 = smov [#allocation5]  }
   0x3   :  { %s18_s16 = sshll.u32 %s284_s15, 4  ;;  %s27_s18 = sshll.u32 %s285_s17, 4  ;;  %s19_s16 = int_to_ptr.vmem [resolvable:$true] %s18_s16  ;;  %s317_s18 = int_to_ptr.vmem [resolvable:$true] %s27_s18 }
   0x4   :  { %s212_s21 = scalar_lea.hbm %s366_s0, 128 }
   0x5   :  { %p213_p0 = scmp.ne.s32.totalorder %s366_s0, %s212_s21  ;;  %p216_p1 = scmp.lt.u32.totalorder %s212_s21, %s366_s0 }
   0x7   :  { %p218_p2 = pnand %p216_p1, %p213_p0 }
   0x9   :  { %221 = shalt.err (!%p218_p2)
}
   0xa   :  { %s222_s26 = scalar_lea.vmem %s19_s16, 128  ;;  %p227_p4 = scmp.lt.s32.totalorder %s19_s16, %s19_s16 }
   0xb   :  { %p223_p3 = scmp.ne.s32.totalorder %s19_s16, %s222_s26  ;;  %p228_p5 = scmp.lt.s32.totalorder %s222_s26, %s222_s26 }
   0xd   :  { %p229_p6 = por %p228_p5, %p227_p4 }
   0xf   :  { %p230_p7 = pnand %p229_p6, %p223_p3 }
  0x11   :  { %233 = shalt.err (!%p230_p7)
}
  0x12   :  { %21 = dma.hbm_to_vmem [thread:$0]  %s366_s0, 128, %s19_s16, [#allocation3]  }
  0x13   :  { %s234_s5 = scalar_lea.hbm %s367_s1, 512 }
  0x14   :  { %p235_p8 = scmp.ne.s32.totalorder %s367_s1, %s234_s5  ;;  %p238_p9 = scmp.lt.u32.totalorder %s234_s5, %s367_s1 }
  0x16   :  { %p240_p10 = pnand %p238_p9, %p235_p8 }
  0x18   :  { %243 = shalt.err (!%p240_p10)
}
  0x19   :  { %s244_s10 = scalar_lea.vmem %s317_s18, 512  ;;  %p249_p12 = scmp.lt.s32.totalorder %s317_s18, %s317_s18 }
  0x1a   :  { %p245_p11 = scmp.ne.s32.totalorder %s317_s18, %s244_s10  ;;  %p250_p13 = scmp.lt.s32.totalorder %s244_s10, %s244_s10 }
  0x1c   :  { %p251_p0 = por %p250_p13, %p249_p12 }
  0x1e   :  { %p252_p1 = pnand %p251_p0, %p245_p11 }
  0x20   :  { %255 = shalt.err (!%p252_p1)
}
  0x21   :  { %s286_s0 = smov 128   ;;  %s287_s11 = smov 8  }
  0x22   :  { %33 = dma.hbm_to_vmem [thread:$0]  %s367_s1, 512, %s317_s18, [#allocation6], %s286_s0, %s286_s0, %s287_s11  }
  0x23   :  { %278 = dma.done.wait [#allocation3], 128  }
  0x24   :  { %279 = vsyncadd [#allocation3], 4294967168 }
  0x25   :  { %280 = dma.done.wait [#allocation6], 512  }
  0x26   :  { %281 = vsyncadd [#allocation6], 4294966784  ;;  %v288_v0 = vmov 0.0|0.0   ;;  %vm289_vm0 = vmmov 0   ;;  %v290_v1 = vmov 0.0   ;;  %v45_v2 = vld [vmem:[#allocation5] sm:$0xff]  ;;  %v148_v28 = vlaneseq }
  0x27   :  { %196 = vmatprep.subr.bf16.mxu0 %v288_v0  ;;  %193 = vmatprep.mubr.msk.f32.mxu0 %vm289_vm0, %v290_v1  ;;  %v46_v3 = vld [vmem:[#allocation5 + $0x8] sm:$0xff]  ;;  %v47_v4 = vld [vmem:[#allocation5 + $0x10] sm:$0xff]  ;;  %v48_v6 = vld [vmem:[#allocation5 + $0x18] sm:$0xff]  ;;  %vm49_vm1 = vcmask 261120   ;;  %s291_s17 = smov [#allocation7]  }
  0x28   :  { %v197_v5 = vpack.c.bf16 %v46_v3, %v45_v2  ;;  %v200_v7 = vpack.c.bf16 %v48_v6, %v47_v4  ;;  %v44_v8 = vld [vmem:[#allocation2] sm:$0xff]  ;;  %v149_v29 = vshrl.u32 %v148_v28, 7  ;;  %s169_s18 = sshll.u32 %s291_s17, 4  ;;  %s170_s18 = int_to_ptr.vmem [resolvable:$true] %s169_s18 }
  0x29   :  { %v140_v30 = vld [vmem:[%s368_s2] sm:$0x1]  ;;  %s256_s19 = scalar_lea.vmem %s170_s18, 128  ;;  %p261_p3 = scmp.lt.s32.totalorder %s170_s18, %s170_s18 }
  0x2a   :  { %198 = vmatpush3.bf16.msra.mxu0 %v197_v5  ;;  %v150_v31 = vsub.s32 0, %v149_v29  ;;  %v144_v34 = vld [vmem:[%s369_s3] sm:$0x1]  ;;  %p257_p2 = scmp.ne.s32.totalorder %s170_s18, %s256_s19  ;;  %p262_p4 = scmp.lt.s32.totalorder %s256_s19, %s256_s19 }
  0x2b   :  { %199 = vmatprep.subr.bf16.mxu0 %v288_v0 }
  0x2c   :  { %p263_p5 = por %p262_p4, %p261_p3 }
  0x2e   :  { %201 = vmatpush3.bf16.msra.mxu0 %v200_v7  ;;  %p264_p6 = pnand %p263_p5, %p257_p2 }
  0x31   :  { %194 = vmatmul.mubr.msk.f32.vlgmr.msra.gmra.mrb[0].mxu0 %vm49_vm1, %v44_v8 }
 0x104   :  { %v119_v9 = vpop.f32.mrb[0].mxu0 }
 0x105   :  { %v123_v10 = vrot.slane %v119_v9, 4  ;;  %v195_v11 = vpop.f32.mrb[1].mxu0 }
 0x107   :  { %v124_v12 = vadd.f32 %v123_v10, %v119_v9 }
 0x109   :  { %v125_v13 = vrot.slane %v124_v12, 2 }
 0x10b   :  { %v126_v14 = vadd.f32 %v125_v13, %v124_v12 }
 0x10d   :  { %v127_v15 = vrot.slane %v126_v14, 1 }
 0x10f   :  { %v128_v16 = vadd.f32 %v127_v15, %v126_v14 }
 0x111   :  { %v130_v17 = vmul.f32 0.125, %v128_v16 }
 0x113   :  { %v131_v18 = vsub.f32 %v119_v9, %v130_v17 }
 0x115   :  { %v132_v19 = vmul.f32 %v131_v18, %v131_v18 }
 0x117   :  { %v133_v20 = vrot.slane %v132_v19, 4 }
 0x119   :  { %v134_v21 = vadd.f32 %v133_v20, %v132_v19 }
 0x11b   :  { %v135_v22 = vrot.slane %v134_v21, 2 }
 0x11d   :  { %v136_v23 = vadd.f32 %v135_v22, %v134_v21 }
 0x11f   :  { %v137_v24 = vrot.slane %v136_v23, 1 }
 0x121   :  { %v138_v25 = vadd.f32 %v137_v24, %v136_v23 }
 0x123   :  { %v139_v26 = vmul.f32 0.125, %v138_v25 }
 0x125   :  { %v141_v27 = vadd.f32 1e-05, %v139_v26 }
 0x127   :  { %210 = vrsqrt.f32 %v141_v27 }
 0x131   :  { %v211_v32 = vpop.eup %210 }
 0x132   :  { %v143_v33 = vmul.f32 %v211_v32, %v140_v30 }
 0x134   :  { %v145_v35 = vmul.f32 %v143_v33, %v130_v17  ;;  %v151_v36 = vrot.slane %v143_v33, %v150_v31 }
 0x136   :  { %v146_v37 = vsub.f32 %v144_v34, %v145_v35  ;;  %v153_v38 = vmul.f32 %v151_v36, %v119_v9 }
 0x138   :  { %v158_v39 = vrot.slane %v146_v37, %v150_v31 }
 0x13a   :  { %v160_v40 = vadd.f32 %v158_v39, %v153_v38 }
 0x13c   :  { %v161_v41 = vmax.f32 %v160_v40, 0.0 }
 0x13e   :  { %162 = vst [vmem:[#allocation7] sm:$0xff] %v161_v41 }
 0x13f   :  { %267 = shalt.err (!%p264_p6)
}
 0x140   :  { %s268_s20 = scalar_lea.hbm %s370_s4, 128 }
 0x141   :  { %p269_p7 = scmp.ne.s32.totalorder %s370_s4, %s268_s20  ;;  %p272_p8 = scmp.lt.u32.totalorder %s268_s20, %s370_s4 }
 0x143   :  { %p274_p9 = pnand %p272_p8, %p269_p7 }
 0x145   :  { %277 = shalt.err (!%p274_p9)
}
 0x146   :  { %172 = dma.vmem_to_hbm [thread:$0]  %s170_s18, 128, %s370_s4, [#allocation4]  }
 0x147   :  { %282 = dma.done.wait [#allocation4], 128  }
 0x148   :  { %283 = vsyncadd [#allocation4], 4294967168 }
 0x149   :  { %176 = vsyncpa [#allocation3], 1 }
 0x14a   :  { %177 = vsyncpa [#allocation6], 1 }
 0x14b   :  { %178 = vsyncpa [#allocation4], 1 }

</bundles_post_ra>
